<compile_context>
chip_gen: v5e
topology: v5e:2x2
jax: 0.10.0
libtpu: 0.0.40
codegen_flags: <defaults>
</compile_context>

<pallas_src>
import functools

import jax
import jax.numpy as jnp
from jax.experimental import pallas as pl
from jax.experimental.pallas import tpu as pltpu


def _mlp_kernel(x_ref, w1_ref, b1_ref, w2_ref, b2_ref, w3_ref, b3_ref,
                w4_ref, b4_ref, o_ref):
    x = x_ref[...]                                              # (1, T) f32

    # fc1 (1 -> 32): degenerate K=1 contraction -> VPU broadcast multiply.
    h = jnp.maximum(w1_ref[...] * x + b1_ref[...], 0.0)        # (32, T)

    # fc2 (32 -> 64): MXU.  If the wrapper packed w2 as bf16 the activation is
    # cast to match; accumulation stays f32 via preferred_element_type.
    h = jnp.dot(w2_ref[...], h.astype(w2_ref.dtype),
                preferred_element_type=jnp.float32)
    h = jnp.maximum(h + b2_ref[...], 0.0)                       # (64, T)

    # fc3 (64 -> 32): MXU.
    h = jnp.dot(w3_ref[...], h.astype(w3_ref.dtype),
                preferred_element_type=jnp.float32)
    h = jnp.maximum(h + b3_ref[...], 0.0)                       # (32, T)

    # fc4 (32 -> 1): degenerate N=1 output -> VPU multiply + sublane reduce.
    y = jnp.sum(w4_ref[...] * h, axis=0, keepdims=True) + b4_ref[...]
    o_ref[...] = y.astype(o_ref.dtype)                          # (1, T)


def _round_up(n, m):
    return ((n + m - 1) // m) * m


def _choose_tile(batch, tile_b):
    """Effective batch tile: as large as allowed, >=2 grid steps when possible."""
    if batch <= 128:
        # Single block that exactly covers the array (block shape == full array
        # shape, so the 128-lane alignment requirement does not apply).
        return batch
    # Aim for at least 2 grid steps so both v7x TensorCores get work, while
    # keeping the tile a multiple of 128 and below the requested cap.
    half = _round_up(-(-batch // 2), 128)
    return max(128, min(tile_b, half))


@functools.partial(jax.jit, static_argnames=("tile_b", "use_bf16_matmul"))
def simple_net_forward(x, params, *, tile_b=16384, use_bf16_matmul=False):
    """Run the 1->32->64->32->1 MLP in one batch-tiled Pallas kernel.

    x: (B, 1) float32.  params: weights in (out, in) torch layout (w4 stored
    transposed as (32, 1)), biases as (out, 1).
    """
    w1, b1 = params["w1"], params["b1"]
    w2, b2 = params["w2"], params["b2"]
    w3, b3 = params["w3"], params["b3"]
    w4, b4 = params["w4"], params["b4"]

    assert tile_b % 128 == 0, "tile_b must be a multiple of 128"
    B = x.shape[0]
    tile = _choose_tile(B, tile_b)
    n_tiles = pl.cdiv(B, tile)

    if use_bf16_matmul:
        # bf16-native MXU path (accuracy-gated by the caller).
        w2 = w2.astype(jnp.bfloat16)
        w3 = w3.astype(jnp.bfloat16)

    # Batch-on-lanes: (B, 1) -> (1, B) is a free reshape (inner dim is 1).
    # No padding and no trailing slice: the ragged last block is masked by
    # Pallas on store, and lanes never interact inside the kernel.
    x_t = x.reshape(1, B)

    x_spec = pl.BlockSpec((1, tile), lambda i: (0, i))
    out_spec = pl.BlockSpec((1, tile), lambda i: (0, i))

    def const_spec(shape):
        # Constant index_map -> weights/biases DMA'd once, VMEM-resident
        # across all grid steps.
        return pl.BlockSpec(shape, lambda i: (0, 0))

    weight_bytes = sum(int(a.size) * a.dtype.itemsize
                       for a in (w1, b1, w2, b2, w3, b3, w4, b4))
    cost = pl.CostEstimate(
        flops=8448 * B,                  # ~2*(32 + 2048 + 2048 + 32) per row
        transcendentals=0,
        bytes_accessed=8 * B + weight_bytes,
    )

    # Per-step VMEM working set: (32+64+32) f32 intermediate rows per batch
    # element + double-buffered (1, tile) I/O tiles + resident weights.
    # Request 2x headroom (but never below the largest per-TC scoped default)
    # so v5e's 16 MiB scoped default never forces a smaller tile; the default
    # tile needs ~10 MiB, comfortably inside v7x's 64 MiB/TC physical VMEM.
    vmem_est = tile * ((32 + 64 + 32) * 4 + 2 * 2 * 4) + weight_bytes + (1 << 20)
    vmem_limit = max(32 << 20, 2 * vmem_est)

    y_t = pl.pallas_call(
        _mlp_kernel,
        out_shape=jax.ShapeDtypeStruct((1, B), jnp.float32),
        grid=(n_tiles,),
        in_specs=[
            x_spec,
            const_spec(w1.shape), const_spec(b1.shape),
            const_spec(w2.shape), const_spec(b2.shape),
            const_spec(w3.shape), const_spec(b3.shape),
            const_spec(w4.shape), const_spec(b4.shape),
        ],
        out_specs=out_spec,
        compiler_params=pltpu.CompilerParams(
            dimension_semantics=("parallel",),
            vmem_limit_bytes=vmem_limit),
        cost_estimate=cost,
    )(x_t, w1, b1, w2, b2, w3, b3, w4, b4)

    # (1, B) -> (B, 1) is again a free reshape (no data movement).
    return y_t.reshape(B, 1)


def init_params(key):
    """Deterministic PyTorch-style (Kaiming-uniform) init.

    Weights stored in torch (out, in) layout except w4, which is stored
    transposed as (in, 1) for the in-kernel multiply+reduce; biases as (out, 1)
    for lane-broadcast in the feature-major layout.
    """
    dims = [(1, 32), (32, 64), (64, 32), (32, 1)]
    params = {}
    for i, (fan_in, fan_out) in enumerate(dims, start=1):
        key, kw, kb = jax.random.split(key, 3)
        bound = 1.0 / jnp.sqrt(fan_in)
        w_shape = (fan_in, fan_out) if i == 4 else (fan_out, fan_in)
        params[f"w{i}"] = jax.random.uniform(
            kw, w_shape, jnp.float32, -bound, bound)
        params[f"b{i}"] = jax.random.uniform(
            kb, (fan_out, 1), jnp.float32, -bound, bound)
    return params


def reference_forward(x, p):
    h = jnp.maximum(x @ p["w1"].T + p["b1"].T, 0.0)
    h = jnp.maximum(h @ p["w2"].T + p["b2"].T, 0.0)
    h = jnp.maximum(h @ p["w3"].T + p["b3"].T, 0.0)
    return h @ p["w4"] + p["b4"].T


if __name__ == "__main__":
    key = jax.random.PRNGKey(0)
    key, kx1, kx2 = jax.random.split(key, 3)
    params = init_params(key)

    # Tiny batch: single block that equals the full array (no padding needed).
    x_small = jax.random.normal(kx1, (8, 1), jnp.float32)
    out = jax.block_until_ready(simple_net_forward(x_small, params))
    ref = reference_forward(x_small, params)
    assert out.shape == (8, 1), out.shape
    assert jnp.allclose(out, ref, atol=1e-5, rtol=1e-5), (out, ref)

    # Moderate batch: exercises the multi-tile grid and the ragged last block
    # (B=300 -> tile=256, 2 grid steps, 44 valid lanes in the last block).
    x_med = jax.random.normal(kx2, (300, 1), jnp.float32)
    out_m = jax.block_until_ready(simple_net_forward(x_med, params))
    ref_m = reference_forward(x_med, params)
    assert out_m.shape == (300, 1), out_m.shape
    assert jnp.allclose(out_m, ref_m, atol=1e-5, rtol=1e-5)

    # Optional bf16-MXU fast path (f32 accumulation) with a looser tolerance.
    out_bf = jax.block_until_ready(
        simple_net_forward(x_med, params, use_bf16_matmul=True))
    assert jnp.allclose(out_bf, ref_m, atol=5e-2, rtol=5e-2)

    print("KERNEL_OK")
</pallas_src>

<mosaic_0001>
module attributes {stable_mosaic.version = 11 : i64} {
  func.func @_mlp_kernel(%arg0: i32, %arg1: memref<1x8xf32, #tpu.memory_space<vmem>>, %arg2: memref<32x1xf32, #tpu.memory_space<vmem>>, %arg3: memref<32x1xf32, #tpu.memory_space<vmem>>, %arg4: memref<64x32xf32, #tpu.memory_space<vmem>>, %arg5: memref<64x1xf32, #tpu.memory_space<vmem>>, %arg6: memref<32x64xf32, #tpu.memory_space<vmem>>, %arg7: memref<32x1xf32, #tpu.memory_space<vmem>>, %arg8: memref<32x1xf32, #tpu.memory_space<vmem>>, %arg9: memref<1x1xf32, #tpu.memory_space<vmem>>, %arg10: memref<1x8xf32, #tpu.memory_space<vmem>>) attributes {dimension_semantics = [#tpu.dimension_semantics<parallel>], iteration_bounds = array<i64: 1>, scalar_prefetch = 0 : i64, scratch_operands = 0 : i64, tpu.core_type = #tpu.core_type<tc>, window_params = [{transform_indices = @transform_0, window_bounds = array<i64: 1, 8>}, {pipeline_mode = #tpu.pipeline_mode<synchronous>, transform_indices = @transform_1, window_bounds = array<i64: 32, 1>}, {pipeline_mode = #tpu.pipeline_mode<synchronous>, transform_indices = @transform_2, window_bounds = array<i64: 32, 1>}, {pipeline_mode = #tpu.pipeline_mode<synchronous>, transform_indices = @transform_3, window_bounds = array<i64: 64, 32>}, {pipeline_mode = #tpu.pipeline_mode<synchronous>, transform_indices = @transform_4, window_bounds = array<i64: 64, 1>}, {pipeline_mode = #tpu.pipeline_mode<synchronous>, transform_indices = @transform_5, window_bounds = array<i64: 32, 64>}, {pipeline_mode = #tpu.pipeline_mode<synchronous>, transform_indices = @transform_6, window_bounds = array<i64: 32, 1>}, {pipeline_mode = #tpu.pipeline_mode<synchronous>, transform_indices = @transform_7, window_bounds = array<i64: 32, 1>}, {pipeline_mode = #tpu.pipeline_mode<synchronous>, transform_indices = @transform_8, window_bounds = array<i64: 1, 1>}, {transform_indices = @transform_9, window_bounds = array<i64: 1, 8>}]} {
    %c0 = arith.constant 0 : index
    %c0_0 = arith.constant 0 : index
    %0 = vector.load %arg1[%c0, %c0_0] : memref<1x8xf32, #tpu.memory_space<vmem>>, vector<1x8xf32>
    %c0_1 = arith.constant 0 : index
    %c0_2 = arith.constant 0 : index
    %1 = vector.load %arg2[%c0_1, %c0_2] : memref<32x1xf32, #tpu.memory_space<vmem>>, vector<32x1xf32>
    %2 = vector.broadcast %1 : vector<32x1xf32> to vector<32x8xf32>
    %3 = vector.broadcast %0 : vector<1x8xf32> to vector<32x8xf32>
    %4 = arith.mulf %2, %3 : vector<32x8xf32>
    %c0_3 = arith.constant 0 : index
    %c0_4 = arith.constant 0 : index
    %5 = vector.load %arg3[%c0_3, %c0_4] : memref<32x1xf32, #tpu.memory_space<vmem>>, vector<32x1xf32>
    %6 = vector.broadcast %5 : vector<32x1xf32> to vector<32x8xf32>
    %7 = arith.addf %4, %6 : vector<32x8xf32>
    %cst = arith.constant 0.000000e+00 : f32
    %8 = vector.broadcast %cst : f32 to vector<32x8xf32>
    %9 = arith.maximumf %7, %8 : vector<32x8xf32>
    %c0_5 = arith.constant 0 : index
    %c0_6 = arith.constant 0 : index
    %10 = vector.load %arg4[%c0_5, %c0_6] : memref<64x32xf32, #tpu.memory_space<vmem>>, vector<64x32xf32>
    %cst_7 = arith.constant dense<0.000000e+00> : vector<64x8xf32>
    %11 = tpu.matmul %10, %9, %cst_7 {dimension_numbers = #tpu.dot_dimension_numbers<[1], [0], [0], [1], [0, 0, 1, 1], [], []>} : vector<64x32xf32>, vector<32x8xf32>, vector<64x8xf32> -> vector<64x8xf32>
    %c0_8 = arith.constant 0 : index
    %c0_9 = arith.constant 0 : index
    %12 = vector.load %arg5[%c0_8, %c0_9] : memref<64x1xf32, #tpu.memory_space<vmem>>, vector<64x1xf32>
    %13 = vector.broadcast %12 : vector<64x1xf32> to vector<64x8xf32>
    %14 = arith.addf %11, %13 : vector<64x8xf32>
    %cst_10 = arith.constant 0.000000e+00 : f32
    %15 = vector.broadcast %cst_10 : f32 to vector<64x8xf32>
    %16 = arith.maximumf %14, %15 : vector<64x8xf32>
    %c0_11 = arith.constant 0 : index
    %c0_12 = arith.constant 0 : index
    %17 = vector.load %arg6[%c0_11, %c0_12] : memref<32x64xf32, #tpu.memory_space<vmem>>, vector<32x64xf32>
    %cst_13 = arith.constant dense<0.000000e+00> : vector<32x8xf32>
    %18 = tpu.matmul %17, %16, %cst_13 {dimension_numbers = #tpu.dot_dimension_numbers<[1], [0], [0], [1], [0, 0, 1, 1], [], []>} : vector<32x64xf32>, vector<64x8xf32>, vector<32x8xf32> -> vector<32x8xf32>
    %c0_14 = arith.constant 0 : index
    %c0_15 = arith.constant 0 : index
    %19 = vector.load %arg7[%c0_14, %c0_15] : memref<32x1xf32, #tpu.memory_space<vmem>>, vector<32x1xf32>
    %20 = vector.broadcast %19 : vector<32x1xf32> to vector<32x8xf32>
    %21 = arith.addf %18, %20 : vector<32x8xf32>
    %cst_16 = arith.constant 0.000000e+00 : f32
    %22 = vector.broadcast %cst_16 : f32 to vector<32x8xf32>
    %23 = arith.maximumf %21, %22 : vector<32x8xf32>
    %c0_17 = arith.constant 0 : index
    %c0_18 = arith.constant 0 : index
    %24 = vector.load %arg8[%c0_17, %c0_18] : memref<32x1xf32, #tpu.memory_space<vmem>>, vector<32x1xf32>
    %25 = vector.broadcast %24 : vector<32x1xf32> to vector<32x8xf32>
    %26 = arith.mulf %25, %23 : vector<32x8xf32>
    %cst_19 = arith.constant dense<0.000000e+00> : vector<8xf32>
    %27 = vector.multi_reduction <add>, %26, %cst_19 [0] : vector<32x8xf32> to vector<8xf32>
    %28 = vector.shape_cast %27 : vector<8xf32> to vector<1x8xf32>
    %c0_20 = arith.constant 0 : index
    %c0_21 = arith.constant 0 : index
    %29 = vector.load %arg9[%c0_20, %c0_21] : memref<1x1xf32, #tpu.memory_space<vmem>>, vector<1x1xf32>
    %30 = vector.broadcast %29 : vector<1x1xf32> to vector<1x8xf32>
    %31 = arith.addf %28, %30 : vector<1x8xf32>
    %c0_22 = arith.constant 0 : index
    %c0_23 = arith.constant 0 : index
    %32 = vector.load %arg10[%c0_22, %c0_23] : memref<1x8xf32, #tpu.memory_space<vmem>>, vector<1x8xf32>
    tpu.vector_store %arg10[%c0_22, %c0_23], %31 {strides = array<i32>} : memref<1x8xf32, #tpu.memory_space<vmem>>, vector<1x8xf32>,
    return
  }
  func.func @transform_0(%arg0: i32) -> (i32, i32) {
    %c0_i32 = arith.constant 0 : i32
    %c0_i32_0 = arith.constant 0 : i32
    return %c0_i32, %arg0 : i32, i32
  }
  func.func @transform_1(%arg0: i32) -> (i32, i32) {
    %c0_i32 = arith.constant 0 : i32
    %c0_i32_0 = arith.constant 0 : i32
    %c0_i32_1 = arith.constant 0 : i32
    return %c0_i32, %c0_i32_0 : i32, i32
  }
  func.func @transform_2(%arg0: i32) -> (i32, i32) {
    %c0_i32 = arith.constant 0 : i32
    %c0_i32_0 = arith.constant 0 : i32
    %c0_i32_1 = arith.constant 0 : i32
    return %c0_i32, %c0_i32_0 : i32, i32
  }
  func.func @transform_3(%arg0: i32) -> (i32, i32) {
    %c0_i32 = arith.constant 0 : i32
    %c0_i32_0 = arith.constant 0 : i32
    %c0_i32_1 = arith.constant 0 : i32
    return %c0_i32, %c0_i32_0 : i32, i32
  }
  func.func @transform_4(%arg0: i32) -> (i32, i32) {
    %c0_i32 = arith.constant 0 : i32
    %c0_i32_0 = arith.constant 0 : i32
    %c0_i32_1 = arith.constant 0 : i32
    return %c0_i32, %c0_i32_0 : i32, i32
  }
  func.func @transform_5(%arg0: i32) -> (i32, i32) {
    %c0_i32 = arith.constant 0 : i32
    %c0_i32_0 = arith.constant 0 : i32
    %c0_i32_1 = arith.constant 0 : i32
    return %c0_i32, %c0_i32_0 : i32, i32
  }
  func.func @transform_6(%arg0: i32) -> (i32, i32) {
    %c0_i32 = arith.constant 0 : i32
    %c0_i32_0 = arith.constant 0 : i32
    %c0_i32_1 = arith.constant 0 : i32
    return %c0_i32, %c0_i32_0 : i32, i32
  }
  func.func @transform_7(%arg0: i32) -> (i32, i32) {
    %c0_i32 = arith.constant 0 : i32
    %c0_i32_0 = arith.constant 0 : i32
    %c0_i32_1 = arith.constant 0 : i32
    return %c0_i32, %c0_i32_0 : i32, i32
  }
  func.func @transform_8(%arg0: i32) -> (i32, i32) {
    %c0_i32 = arith.constant 0 : i32
    %c0_i32_0 = arith.constant 0 : i32
    %c0_i32_1 = arith.constant 0 : i32
    return %c0_i32, %c0_i32_0 : i32, i32
  }
  func.func @transform_9(%arg0: i32) -> (i32, i32) {
    %c0_i32 = arith.constant 0 : i32
    %c0_i32_0 = arith.constant 0 : i32
    return %c0_i32, %arg0 : i32, i32
  }
}

</mosaic_0001>

<bundles_post_ra>
// kernel: simple_net_forward.1
= control target key start
LH: loop header
LB: loop body
LE: loop exit
PB: predicated region body
PF: predicated region fallthrough
CT: control target
= control target key end

     0   :  { %s604_s0 = inlined_call_operand.vmem [shape: f32[1,8], index: 0, kind: input, shape index: {}]   ;;  %s605_s1 = inlined_call_operand.vmem [shape: f32[32,1], index: 1, kind: input, shape index: {}]   ;;  %s606_s2 = inlined_call_operand.vmem [shape: f32[32,1], index: 2, kind: input, shape index: {}]   ;;  %s607_s3 = inlined_call_operand.vmem [shape: f32[64,32], index: 3, kind: input, shape index: {}]   ;;  %s608_s4 = inlined_call_operand.vmem [shape: f32[64,1], index: 4, kind: input, shape index: {}]   ;;  %s609_s5 = inlined_call_operand.vmem [shape: f32[32,64], index: 5, kind: input, shape index: {}]   ;;  %s610_s6 = inlined_call_operand.vmem [shape: f32[32,1], index: 6, kind: input, shape index: {}]   ;;  %s611_s7 = inlined_call_operand.vmem [shape: f32[32,1], index: 7, kind: input, shape index: {}]   ;;  %s612_s8 = inlined_call_operand.<no memory space> [shape: f32[1,1], index: 8, kind: input, shape index: {}]   ;;  %s613_s9 = inlined_call_operand.hbm [shape: f32[1,8], index: 9, kind: output, shape index: {}]  }
   0x1   :  { %v14_v0 = vstv %s612_s8 }
   0x2   :  { %15 = vst [vmem:[#allocation2] sm:$0x1] %v14_v0 }
   0x3   :  { %v69_v1 = vld [vmem:[%s606_s2 + $0x10] sm:$0xff]  ;;  %v70_v2 = vld [vmem:[%s606_s2 + $0x18] sm:$0xff]  ;;  %v427_v4 = vmov 0  }
   0x4   :  { %v39_v3 = vld [vmem:[%s605_s1 + $0x18] sm:$0xff]  ;;  %399 = vset.pattern.permute.xlu2 %v427_v4  ;;  %398 = vset.pattern.permute.xlu1 %v427_v4 }
   0x5   :  { %397 = vset.pattern.permute.xlu0 %v427_v4  ;;  %83 = vperm.xlu2 %399, %v69_v1  }
   0x6   :  { %88 = vperm.xlu1 %398, %v70_v2   ;;  %57 = vperm.xlu0 %397, %v39_v3  }
   0x7   :  { %16 = vsyncpa [#allocation4], 0  ;;  %v36_v5 = vld [vmem:[%s605_s1] sm:$0xff]  ;;  %v38_v6 = vld [vmem:[%s605_s1 + $0x10] sm:$0xff]  ;;  %vm155_vm0 = vcmask 261120   ;;  %vm257_vm1 = vcmask 523264  }
   0x8   :  { %v37_v7 = vld [vmem:[%s605_s1 + $0x8] sm:$0xff]  ;;  %v114_v8 = vld [vmem:[%s608_s4 + $0x38] sm:$0xff]  ;;  %v67_v10 = vld [vmem:[%s606_s2] sm:$0xff]  ;;  %vm331_vm2 = vcmask 64512   ;;  %vm353_vm3 = vcmask 57344  }
   0x9   :  { %v68_v9 = vld [vmem:[%s606_s2 + $0x8] sm:$0xff]  ;;  %v111_v11 = vld [vmem:[%s608_s4 + $0x20] sm:$0xff]  ;;  %v113_v12 = vld [vmem:[%s608_s4 + $0x30] sm:$0xff] }
   0xa   :  { %v112_v13 = vld [vmem:[%s608_s4 + $0x28] sm:$0xff]  ;;  %v110_v15 = vld [vmem:[%s608_s4 + $0x18] sm:$0xff]  ;;  %v109_v16 = vld [vmem:[%s608_s4 + $0x10] sm:$0xff] }
   0xb   :  { %v108_v14 = vld [vmem:[%s608_s4 + $0x8] sm:$0xff]  ;;  %v107_v18 = vld [vmem:[%s608_s4] sm:$0xff]  ;;  %v235_v21 = vld [vmem:[%s610_s6 + $0x10] sm:$0xff] }
   0xc   :  { %v234_v17 = vld [vmem:[%s610_s6 + $0x8] sm:$0xff]  ;;  %v233_v19 = vld [vmem:[%s610_s6] sm:$0xff]  ;;  %v236_v22 = vld [vmem:[%s610_s6 + $0x18] sm:$0xff]  ;;  %s362_s6 = sshll.u32 %s613_s9, 4  ;;  %s363_s6 = int_to_ptr.hbm [resolvable:$true] %s362_s6 }
   0xd   :  { %42 = vperm.xlu2 %399, %v36_v5   ;;  %v303_v20 = vld [vmem:[%s611_s7] sm:$0xff]  ;;  %v306_v23 = vld [vmem:[%s611_s7 + $0x18] sm:$0xff]  ;;  %v304_v24 = vld [vmem:[%s611_s7 + $0x8] sm:$0xff] }
   0xe   :  { %52 = vperm.xlu0 %397, %v38_v6   ;;  %47 = vperm.xlu1 %398, %v37_v7   ;;  %v305_v25 = vld [vmem:[%s611_s7 + $0x10] sm:$0xff]  ;;  %v345_v26 = vld [vmem:[#allocation2] sm:$0x1]  ;;  %v102_v49 = vld [vmem:[%s607_s3 + $0x18] sm:$0xff] }
   0xf   :  { %v400_v27 = vld [vmem:[%s604_s0] ss:$0 sm:$0xff]  ;;  %v100_v50 = vld [vmem:[%s607_s3 + $0x8] sm:$0xff]  ;;  %v101_v52 = vld [vmem:[%s607_s3 + $0x10] sm:$0xff] }
  0x10   :  { %v99_v48 = vld [vmem:[%s607_s3] sm:$0xff]  ;;  %v104_v53 = vld [vmem:[%s607_s3 + $0x28] sm:$0xff]  ;;  %v105_v54 = vld [vmem:[%s607_s3 + $0x30] sm:$0xff] }
  0x11   :  { %v103_v51 = vld [vmem:[%s607_s3 + $0x20] sm:$0xff]  ;;  %v106_v55 = vld [vmem:[%s607_s3 + $0x38] sm:$0xff] }
  0x15   :  { %152 = vperm.xlu2 %399, %v114_v8  }
  0x16   :  { %78 = vperm.xlu0 %397, %v68_v9   ;;  %73 = vperm.xlu1 %398, %v67_v10  }
  0x1d   :  { %137 = vperm.xlu2 %399, %v111_v11  }
  0x1e   :  { %147 = vperm.xlu0 %397, %v113_v12   ;;  %142 = vperm.xlu1 %398, %v112_v13  }
  0x25   :  { %122 = vperm.xlu2 %399, %v108_v14  }
  0x26   :  { %132 = vperm.xlu0 %397, %v110_v15   ;;  %127 = vperm.xlu1 %398, %v109_v16  }
  0x2d   :  { %244 = vperm.xlu2 %399, %v234_v17  }
  0x2e   :  { %117 = vperm.xlu0 %397, %v107_v18   ;;  %239 = vperm.xlu1 %398, %v233_v19  }
  0x35   :  { %309 = vperm.xlu2 %399, %v303_v20  }
  0x36   :  { %249 = vperm.xlu0 %397, %v235_v21   ;;  %254 = vperm.xlu1 %398, %v236_v22  }
  0x3d   :  { %324 = vperm.xlu2 %399, %v306_v23  }
  0x3e   :  { %314 = vperm.xlu0 %397, %v304_v24   ;;  %319 = vperm.xlu1 %398, %v305_v25   ;;  %v229_v24 = vld [vmem:[%s609_s5] sm:$0xff]  ;;  %v230_v25 = vld [vmem:[%s609_s5 + $0x8] sm:$0xff] }
  0x46   :  { %348 = vperm.xlu0 %397, %v345_v26   ;;  %v231_v26 = vld [vmem:[%s609_s5 + $0x10] sm:$0xff] }
  0x5f   :  { %v84_v32 = vpop.permute.xlu2 %83 }
  0x67   :  { %v43_v39 = vpop.permute.xlu2 %42 }
  0x68   :  { %v63_v40 = vmul.f32 %v400_v27, %v43_v39 }
  0x6f   :  { %v153_v60 = vpop.permute.xlu2 %152 }
  0x77   :  { %v138_v1 = vpop.permute.xlu2 %137 }
  0x78   :  { %v89_v28 = vpop.permute.xlu1 %88  ;;  %v58_v29 = vpop.permute.xlu0 %57 }
  0x79   :  { %v66_v30 = vmul.f32 %v400_v27, %v58_v29 }
  0x7b   :  { %v94_v31 = vadd.f32 %v89_v28, %v66_v30 }
  0x7d   :  { %v98_v33 = vmax.f32 %v94_v31, 0.0 }
  0x7f   :  { %192 = vmatpush.msra.mxu0 %v98_v33  ;;  %383 = vmatpush.msra.mxu2 %v98_v33  ;;  %v123_v16 = vpop.permute.xlu2 %122 }
  0x80   :  { %v53_v34 = vpop.permute.xlu0 %52  ;;  %v48_v35 = vpop.permute.xlu1 %47 }
  0x81   :  { %v65_v36 = vmul.f32 %v400_v27, %v53_v34  ;;  %v64_v41 = vmul.f32 %v400_v27, %v48_v35  ;;  %v232_v27 = vld [vmem:[%s609_s5 + $0x18] sm:$0xff]  ;;  %s428_s5 = smov [#allocation3]  }
  0x82   :  { %s360_s29 = sshll.u32 %s428_s5, 4  ;;  %s361_s29 = int_to_ptr.vmem [resolvable:$true] %s360_s29 }
  0x83   :  { %v93_v37 = vadd.f32 %v84_v32, %v65_v36 }
  0x85   :  { %v97_v38 = vmax.f32 %v93_v37, 0.0 }
  0x87   :  { %193 = vmatpush.msra.mxu0 %v97_v38  ;;  %384 = vmatpush.msra.mxu2 %v97_v38  ;;  %v245_v29 = vpop.permute.xlu2 %244 }
  0x88   :  { %v79_v42 = vpop.permute.xlu0 %78  ;;  %v74_v43 = vpop.permute.xlu1 %73 }
  0x89   :  { %v92_v44 = vadd.f32 %v79_v42, %v64_v41  ;;  %v91_v45 = vadd.f32 %v74_v43, %v63_v40 }
  0x8b   :  { %v96_v46 = vmax.f32 %v92_v44, 0.0  ;;  %v95_v47 = vmax.f32 %v91_v45, 0.0 }
  0x8d   :  { %194 = vmatpush.msra.mxu0 %v96_v46  ;;  %385 = vmatpush.msra.mxu2 %v96_v46 }
  0x8f   :  { %195 = vmatpush.msra.mxu0 %v95_v47  ;;  %386 = vmatpush.msra.mxu2 %v95_v47  ;;  %v310_v39 = vpop.permute.xlu2 %309 }
  0x90   :  { %371 = vmatmul.msk.f32.vlgmr.msra.gmra.mxu0 %vm155_vm0, %v99_v48  ;;  %374 = vmatmul.msk.f32.vlgmr.msra.gmra.mxu2 %vm155_vm0, %v102_v49  ;;  %v148_v61 = vpop.permute.xlu0 %147  ;;  %v143_v0 = vpop.permute.xlu1 %142 }
  0x98   :  { %372 = vmatmul.msk.f32.gmra.mxu0 %vm155_vm0, %v100_v50  ;;  %375 = vmatmul.msk.f32.gmra.mxu2 %vm155_vm0, %v103_v51  ;;  %v133_v5 = vpop.permute.xlu0 %132  ;;  %v128_v13 = vpop.permute.xlu1 %127 }
  0xa0   :  { %373 = vmatmul.msk.f32.gmra.mxu0 %vm155_vm0, %v101_v52  ;;  %376 = vmatmul.msk.f32.gmra.mxu2 %vm155_vm0, %v104_v53  ;;  %v118_v19 = vpop.permute.xlu0 %117  ;;  %v240_v28 = vpop.permute.xlu1 %239 }
  0xa1   :  { %v325_v53 = vpop.permute.xlu2 %324 }
  0xa8   :  { %377 = vmatmul.msk.f32.gmra.mxu2 %vm155_vm0, %v105_v54  ;;  %v250_v31 = vpop.permute.xlu0 %249  ;;  %v255_v32 = vpop.permute.xlu1 %254 }
  0xb0   :  { %378 = vmatmul.msk.f32.gmra.mxu2 %vm155_vm0, %v106_v55  ;;  %v315_v42 = vpop.permute.xlu0 %314  ;;  %v320_v44 = vpop.permute.xlu1 %319 }
 0x10d   :  { %v197_v59 = vpop.f32.mrf.mxu0 }
 0x10e   :  { %v198_v20 = vadd.f32 %v197_v59, %v118_v19 }
 0x110   :  { %v221_v23 = vmax.f32 %v198_v20, 0.0 }
 0x113   :  { %v206_v56 = vpop.f32.mrf.mxu2 }
 0x114   :  { %v207_v11 = vadd.f32 %v206_v56, %v133_v5 }
 0x115   :  { %v200_v63 = vpop.f32.mrf.mxu0 }
 0x116   :  { %v224_v17 = vmax.f32 %v207_v11, 0.0  ;;  %v201_v18 = vadd.f32 %v200_v63, %v123_v16  ;;  %v349_v63 = vpop.permute.xlu0 %348 }
 0x118   :  { %v222_v22 = vmax.f32 %v201_v18, 0.0 }
 0x11b   :  { %v209_v57 = vpop.f32.mrf.mxu2 }
 0x11c   :  { %v210_v8 = vadd.f32 %v209_v57, %v138_v1  ;;  %v351_v1 = vperm.slane %v349_v63, 0 }
 0x11d   :  { %v203_v10 = vpop.f32.mrf.mxu0 }
 0x11e   :  { %v225_v14 = vmax.f32 %v210_v8, 0.0  ;;  %v204_v15 = vadd.f32 %v203_v10, %v128_v13 }
 0x120   :  { %v223_v21 = vmax.f32 %v204_v15, 0.0 }
 0x123   :  { %v212_v58 = vpop.f32.mrf.mxu2 }
 0x124   :  { %v213_v6 = vadd.f32 %v212_v58, %v143_v0 }
 0x126   :  { %v226_v12 = vmax.f32 %v213_v6, 0.0 }
 0x12b   :  { %v215_v62 = vpop.f32.mrf.mxu2 }
 0x12c   :  { %v216_v3 = vadd.f32 %v215_v62, %v148_v61 }
 0x12e   :  { %v227_v9 = vmax.f32 %v216_v3, 0.0 }
 0x133   :  { %v218_v2 = vpop.f32.mrf.mxu2 }
 0x134   :  { %v219_v4 = vadd.f32 %v218_v2, %v153_v60 }
 0x136   :  { %v228_v7 = vmax.f32 %v219_v4, 0.0 }
 0x138   :  { %278 = vmatpush.msra.mxu1 %v228_v7  ;;  %387 = vmatpush.msra.mxu3 %v228_v7 }
 0x13a   :  { %279 = vmatpush.msra.mxu1 %v227_v9  ;;  %388 = vmatpush.msra.mxu3 %v227_v9 }
 0x13c   :  { %280 = vmatpush.msra.mxu1 %v226_v12  ;;  %389 = vmatpush.msra.mxu3 %v226_v12 }
 0x13e   :  { %281 = vmatpush.msra.mxu1 %v225_v14  ;;  %390 = vmatpush.msra.mxu3 %v225_v14 }
 0x140   :  { %282 = vmatpush.msra.mxu1 %v224_v17  ;;  %391 = vmatpush.msra.mxu3 %v224_v17 }
 0x142   :  { %283 = vmatpush.msra.mxu1 %v223_v21  ;;  %392 = vmatpush.msra.mxu3 %v223_v21 }
 0x144   :  { %284 = vmatpush.msra.mxu1 %v222_v22  ;;  %393 = vmatpush.msra.mxu3 %v222_v22 }
 0x146   :  { %285 = vmatpush.msra.mxu1 %v221_v23  ;;  %394 = vmatpush.msra.mxu3 %v221_v23 }
 0x147   :  { %379 = vmatmul.msk.f32.vlgmr.msra.gmra.mxu1 %vm257_vm1, %v229_v24  ;;  %380 = vmatmul.msk.f32.vlgmr.msra.gmra.mxu3 %vm257_vm1, %v230_v25 }
 0x14f   :  { %381 = vmatmul.msk.f32.gmra.mxu3 %vm257_vm1, %v231_v26 }
 0x157   :  { %382 = vmatmul.msk.f32.gmra.mxu3 %vm257_vm1, %v232_v27 }
 0x1c4   :  { %v287_v33 = vpop.f32.mrf.mxu1 }
 0x1c5   :  { %v288_v35 = vadd.f32 %v287_v33, %v240_v28 }
 0x1c7   :  { %v299_v40 = vmax.f32 %v288_v35, 0.0 }
 0x1c9   :  { %v327_v45 = vmul.f32 %v310_v39, %v299_v40 }
 0x1ca   :  { %v290_v30 = vpop.f32.mrf.mxu3 }
 0x1cb   :  { %v291_v34 = vadd.f32 %v290_v30, %v245_v29  ;;  %v332_v50 = vsel %vm331_vm2, %v327_v45, 0.0 }
 0x1cd   :  { %v300_v37 = vmax.f32 %v291_v34, 0.0 }
 0x1cf   :  { %v328_v43 = vmul.f32 %v315_v42, %v300_v37 }
 0x1d1   :  { %v333_v48 = vsel %vm331_vm2, %v328_v43, 0.0 }
 0x1d2   :  { %v293_v36 = vpop.f32.mrf.mxu3  ;;  %v334_v54 = vadd.f32 %v333_v48, %v332_v50 }
 0x1d3   :  { %v294_v38 = vadd.f32 %v293_v36, %v250_v31 }
 0x1d5   :  { %v301_v41 = vmax.f32 %v294_v38, 0.0 }
 0x1d7   :  { %v329_v46 = vmul.f32 %v320_v44, %v301_v41 }
 0x1d9   :  { %v335_v51 = vsel %vm331_vm2, %v329_v46, 0.0 }
 0x1da   :  { %v296_v47 = vpop.f32.mrf.mxu3  ;;  %v336_v56 = vadd.f32 %v335_v51, %v334_v54 }
 0x1db   :  { %v297_v49 = vadd.f32 %v296_v47, %v255_v32 }
 0x1dd   :  { %v302_v52 = vmax.f32 %v297_v49, 0.0 }
 0x1df   :  { %v330_v55 = vmul.f32 %v325_v53, %v302_v52 }
 0x1e1   :  { %v337_v57 = vsel %vm331_vm2, %v330_v55, 0.0 }
 0x1e2   :  { %v338_v58 = vadd.f32 %v337_v57, %v336_v56 }
 0x1e4   :  { %v339_v59 = vrot.slane %v338_v58, 4 }
 0x1e6   :  { %v340_v60 = vadd.f32 %v339_v59, %v338_v58 }
 0x1e8   :  { %v341_v61 = vrot.slane %v340_v60, 2 }
 0x1ea   :  { %v342_v62 = vadd.f32 %v341_v61, %v340_v60 }
 0x1ec   :  { %v343_v0 = vrot.slane %v342_v62, 1 }
 0x1ee   :  { %v344_v2 = vadd.f32 %v343_v0, %v342_v62 }
 0x1f0   :  { %v352_v3 = vadd.f32 %v351_v1, %v344_v2 }
 0x1f2   :  { %354 = vst.msk [vmem:[#allocation3] sm:$0x1] %vm353_vm3, %v352_v3 }
 0x1f3   :  { %365 = dma.vmem_to_hbm [thread:$0]  %s361_s29, 16, %s363_s6, [#allocation4]  }
 0x1f4   :  { %425 = dma.done.wait [#allocation4], 16  }
 0x1f5   :  { %426 = vsyncadd [#allocation4], 4294967280 }
 0x1f6   :  { %370 = vsyncpa [#allocation4], 1 }

</bundles_post_ra>
